<compile_context>
chip_gen: v7x
topology: tpu7x:2x2x1
jax: 0.10.0
libtpu: 0.0.40
codegen_flags: <defaults>
</compile_context>

<pallas_src>
import functools

import jax
import jax.numpy as jnp
from jax.experimental import pallas as pl
from jax.experimental.pallas import tpu as pltpu


def _round_up(a, m):
    return ((a + m - 1) // m) * m


def ff1_kernel(x_ref, w1_ref, w2_ref, o_ref, *, bf16_elementwise):
    # x_ref:  [tm, Dp] bf16  (column `in_dim` is the constant-1 bias carrier)
    # w1_ref: [Dp, Wp] bf16  (row `in_dim` holds b1; zero padding elsewhere)
    # w2_ref: [1,  Wp] bf16 (v6e/v7x) or f32 (v5e and older)
    # o_ref:  [tm, 1]  f32
    h = jnp.dot(x_ref[...], w1_ref[...], preferred_element_type=jnp.float32)  # MXU, f32 acc
    if bf16_elementwise:
        # bf16 VALU path (v6e / v7x): ReLU + w2 multiply on packed [16,128] vregs.
        p = jnp.maximum(h.astype(jnp.bfloat16), 0) * w2_ref[...]
        o_ref[...] = jnp.sum(p.astype(jnp.float32), axis=-1, keepdims=True)   # VPU adds + XLU
    else:
        # f32 path (v5e and older: no bf16 VALU).
        p = jnp.maximum(h, 0.0) * w2_ref[...]
        o_ref[...] = jnp.sum(p, axis=-1, keepdims=True)


def prep_ff1_params(w1, b1, w2):
    """Fold bias into W1^T and pad to TPU-friendly shapes.

    w1: [width, in_dim] (torch layout), b1: [width], w2: [1, width] -- all f32.
    Returns (w1_aug [Dp, Wp] bf16, w2_row [1, Wp] f32, Dp).
    """
    width, in_dim = w1.shape
    wp = _round_up(width, 128)          # hidden: lane multiple -> dense vregs
    dp = _round_up(in_dim + 1, 64)      # contraction: +1 bias column, pad dense
    w1_aug = jnp.concatenate([w1.T, b1[None, :]], axis=0)                # [in_dim+1, width]
    w1_aug = jnp.pad(w1_aug, ((0, dp - (in_dim + 1)), (0, wp - width)))
    w1_aug = w1_aug.astype(jnp.bfloat16)  # bias now applied in bf16 (within test tolerance)
    w2_row = jnp.pad(w2, ((0, 0), (0, wp - width))).astype(jnp.float32)
    return w1_aug, w2_row, dp


def prep_ff1_input(x, dp):
    """Append the constant-1 bias column, zero-pad features to dp, cast bf16."""
    B, in_dim = x.shape
    x_aug = jnp.concatenate([x, jnp.ones((B, 1), x.dtype)], axis=1)
    x_aug = jnp.pad(x_aug, ((0, 0), (0, dp - (in_dim + 1))))
    return x_aug.astype(jnp.bfloat16)


def ff1_forward(x_aug, w1_aug, w2_row, *, tm_max=512, bf16_elementwise=None):
    """x_aug: [B, Dp] bf16, w1_aug: [Dp, Wp] bf16, w2_row: [1, Wp] f32 -> [B, 1] f32."""
    B, Dp = x_aug.shape
    Wp = w1_aug.shape[1]

    if bf16_elementwise is None:
        kind = jax.devices()[0].device_kind.lower()
        bf16_elementwise = ("v6" in kind) or ("v7" in kind)   # chips with bf16 VALUs
    w2 = w2_row.astype(jnp.bfloat16) if bf16_elementwise else w2_row

    # Batch tiling: multiples of 16 (bf16 sublane tile), biggest tile up to tm_max,
    # but keep >= 2 grid steps when possible so both v7x TensorCores get work.
    tm_max = max(16, (tm_max // 16) * 16)
    Bp = _round_up(B, 16)
    tm = min(tm_max, max(16, _round_up(pl.cdiv(Bp, 2), 16)))
    Bp = _round_up(Bp, tm)
    if Bp != B:
        x_aug = jnp.pad(x_aug, ((0, Bp - B), (0, 0)))
    grid = (Bp // tm,)

    # VMEM per step at tm=512: x 64 KiB (x2 buffers) + W1 128 KiB + w2 <=4 KiB
    # + ~2-4 MiB of f32/bf16 [tm, Wp] intermediates -- far below every
    # generation's default scoped VMEM (16/32 MiB), so no vmem_limit override.
    w2_bytes = Wp * jnp.dtype(w2.dtype).itemsize
    cost = pl.CostEstimate(
        flops=2 * Bp * Dp * Wp + 3 * Bp * Wp,
        transcendentals=0,
        bytes_accessed=(Bp * Dp * 2) + (Dp * Wp * 2) + w2_bytes + (Bp * 4),
    )

    kernel = functools.partial(ff1_kernel, bf16_elementwise=bf16_elementwise)
    out = pl.pallas_call(
        kernel,
        out_shape=jax.ShapeDtypeStruct((Bp, 1), jnp.float32),
        grid=grid,
        in_specs=[
            pl.BlockSpec((tm, Dp), lambda i: (i, 0)),   # x tile: streamed over batch
            pl.BlockSpec((Dp, Wp), lambda i: (0, 0)),   # W1^T (+ bias row): resident
            pl.BlockSpec((1, Wp), lambda i: (0, 0)),    # w2 row: resident
        ],
        out_specs=pl.BlockSpec((tm, 1), lambda i: (i, 0)),
        compiler_params=pltpu.CompilerParams(
            dimension_semantics=("parallel",),          # batch tiles across v7x's 2 TCs
        ),
        cost_estimate=cost,
    )(x_aug, w1_aug, w2)

    return out[:B]


if __name__ == "__main__":
    input_dim, width = 40, 1000
    batch = 64

    key = jax.random.PRNGKey(0)
    k_x, k_w1, k_b1, k_w2 = jax.random.split(key, 4)

    # Deterministic parameter init (mimics torch.nn.Linear's uniform(-1/sqrt(fan_in), ...)).
    bound1 = 1.0 / jnp.sqrt(input_dim)
    w1 = jax.random.uniform(k_w1, (width, input_dim), jnp.float32, -bound1, bound1)  # torch layout
    b1 = jax.random.uniform(k_b1, (width,), jnp.float32, -bound1, bound1)
    bound2 = 1.0 / jnp.sqrt(width)
    w2 = jax.random.uniform(k_w2, (1, width), jnp.float32, -bound2, bound2)          # torch layout

    x = jax.random.normal(k_x, (batch, input_dim), jnp.float32)

    # Host-side prep (plain JAX glue): fold bias, pad 40->64 / 1000->1024, cast bf16.
    w1_aug, w2_row, dp = prep_ff1_params(w1, b1, w2)
    x_aug = prep_ff1_input(x, dp)

    out = ff1_forward(x_aug, w1_aug, w2_row)
    out = jax.block_until_ready(out)
    assert out.shape == (batch, 1)

    # Reference 1: same math as the kernel on the same bf16-rounded operands.
    ref = (
        jnp.maximum(x_aug.astype(jnp.float32) @ w1_aug.astype(jnp.float32), 0.0)
        @ w2_row.T
    )
    assert jnp.allclose(out, ref, atol=1e-2, rtol=1e-2)

    # Reference 2: the original module's pure-f32 math (validates the bias fold).
    ref_full = jnp.maximum(x @ w1.T + b1[None, :], 0.0) @ w2.T
    assert jnp.allclose(out, ref_full, atol=3e-2, rtol=3e-2)

    # TODO(synk): masked_forward (extra elementwise mask before linear2) not implemented;
    # the spec's forward() is what this kernel covers.
    print("KERNEL_OK")
</pallas_src>

<mosaic_0001>
module attributes {stable_mosaic.version = 11 : i64} {
  func.func @ff1_kernel(%arg0: i32, %arg1: memref<32x64xbf16, #tpu.memory_space<vmem>>, %arg2: memref<64x1024xbf16, #tpu.memory_space<vmem>>, %arg3: memref<1x1024xf32, #tpu.memory_space<vmem>>, %arg4: memref<32x1xf32, #tpu.memory_space<vmem>>) attributes {dimension_semantics = [#tpu.dimension_semantics<parallel>], iteration_bounds = array<i64: 2>, scalar_prefetch = 0 : i64, scratch_operands = 0 : i64, tpu.core_type = #tpu.core_type<tc>, window_params = [{transform_indices = @transform_0, window_bounds = array<i64: 32, 64>}, {pipeline_mode = #tpu.pipeline_mode<synchronous>, transform_indices = @transform_1, window_bounds = array<i64: 64, 1024>}, {pipeline_mode = #tpu.pipeline_mode<synchronous>, transform_indices = @transform_2, window_bounds = array<i64: 1, 1024>}, {transform_indices = @transform_3, window_bounds = array<i64: 32, 1>}]} {
    %c0 = arith.constant 0 : index
    %c0_0 = arith.constant 0 : index
    %0 = vector.load %arg1[%c0, %c0_0] : memref<32x64xbf16, #tpu.memory_space<vmem>>, vector<32x64xbf16>
    %c0_1 = arith.constant 0 : index
    %c0_2 = arith.constant 0 : index
    %1 = vector.load %arg2[%c0_1, %c0_2] : memref<64x1024xbf16, #tpu.memory_space<vmem>>, vector<64x1024xbf16>
    %cst = arith.constant dense<0.000000e+00> : vector<32x1024xf32>
    %2 = tpu.matmul %0, %1, %cst {dimension_numbers = #tpu.dot_dimension_numbers<[1], [0], [0], [1], [0, 0, 1, 1], [], []>} : vector<32x64xbf16>, vector<64x1024xbf16>, vector<32x1024xf32> -> vector<32x1024xf32>
    %cst_3 = arith.constant 0.000000e+00 : f32
    %3 = vector.broadcast %cst_3 : f32 to vector<32x1024xf32>
    %4 = arith.maximumf %2, %3 : vector<32x1024xf32>
    %c0_4 = arith.constant 0 : index
    %c0_5 = arith.constant 0 : index
    %5 = vector.load %arg3[%c0_4, %c0_5] : memref<1x1024xf32, #tpu.memory_space<vmem>>, vector<1x1024xf32>
    %6 = vector.broadcast %5 : vector<1x1024xf32> to vector<32x1024xf32>
    %7 = arith.mulf %4, %6 : vector<32x1024xf32>
    %cst_6 = arith.constant dense<0.000000e+00> : vector<32xf32>
    %8 = vector.multi_reduction <add>, %7, %cst_6 [1] : vector<32x1024xf32> to vector<32xf32>
    %9 = vector.shape_cast %8 : vector<32xf32> to vector<32x1xf32>
    %c0_7 = arith.constant 0 : index
    %c0_8 = arith.constant 0 : index
    %10 = vector.load %arg4[%c0_7, %c0_8] : memref<32x1xf32, #tpu.memory_space<vmem>>, vector<32x1xf32>
    tpu.vector_store %arg4[%c0_7, %c0_8], %9 {strides = array<i32>} : memref<32x1xf32, #tpu.memory_space<vmem>>, vector<32x1xf32>,
    return
  }
  func.func @transform_0(%arg0: i32) -> (i32, i32) {
    %c0_i32 = arith.constant 0 : i32
    %c0_i32_0 = arith.constant 0 : i32
    return %arg0, %c0_i32 : i32, i32
  }
  func.func @transform_1(%arg0: i32) -> (i32, i32) {
    %c0_i32 = arith.constant 0 : i32
    %c0_i32_0 = arith.constant 0 : i32
    %c0_i32_1 = arith.constant 0 : i32
    return %c0_i32, %c0_i32_0 : i32, i32
  }
  func.func @transform_2(%arg0: i32) -> (i32, i32) {
    %c0_i32 = arith.constant 0 : i32
    %c0_i32_0 = arith.constant 0 : i32
    %c0_i32_1 = arith.constant 0 : i32
    return %c0_i32, %c0_i32_0 : i32, i32
  }
  func.func @transform_3(%arg0: i32) -> (i32, i32) {
    %c0_i32 = arith.constant 0 : i32
    %c0_i32_0 = arith.constant 0 : i32
    return %arg0, %c0_i32 : i32, i32
  }
}

</mosaic_0001>

<bundles_post_ra>
// kernel: tpu_custom_call.1
= control target key start
LH: loop header
LB: loop body
LE: loop exit
PB: predicated region body
PF: predicated region fallthrough
CT: control target
= control target key end

     0   :  { %8 = vsyncpa [#allocation3], 0  ;;  %s1381_s0 = inlined_call_operand.hbm [shape: bf16[64,64], index: 0, kind: input, shape index: {}]   ;;  %s1382_s1 = inlined_call_operand.hbm [shape: bf16[64,1024], index: 1, kind: input, shape index: {}]   ;;  %s1383_s2 = inlined_call_operand.hbm [shape: f32[1,1024], index: 2, kind: input, shape index: {}]   ;;  %s1384_s3 = inlined_call_operand.vmem [shape: f32[64,1], index: 3, kind: output, shape index: {}]  }
   0x1   :  { %10 = vsyncpa [#allocation3 + $0x1], 0 }
   0x2   :  { %11 = vsyncpa [#allocation5], 0  ;;  %s1160_s12 = smov 0   ;;  %s1162_s13 = smov 0  }
   0x3   :  { %s1164_s14 = smov 0   ;;  %s1166_s15 = smov 0  }
   0x4 LB: > { %s879_s16 = sadd.s32 4294967295, %s1130_s15   ;;  %p37_p0 = scmp.ne.s32.totalorder %s1122_s13, %s1118_s12  ;;  %s1130_s15 = sphi %s1166_s15, %s1400_s15   ;;  %s1126_s14 = sphi %s1164_s14, %s1399_s14   ;;  %s1122_s13 = sphi %s1162_s13, %s1398_s13   ;;  %s1118_s12 = sphi %s1160_s12, %s1397_s12  }
   0x5   : > { %p1182_p1 = scmp.eq.s32.totalorder %s879_s16, 0  ;;  %p881_p2 = scmp.ge.s32.totalorder %s1130_s15, 1 }
   0x6   : > { %p116_p3 = scmp.lt.s32.totalorder %s1130_s15, 3  ;;  %s1132_s20 = smov [#allocation4]  }
   0x7   : > { %s1389_s17 = scalar_select %p1182_p1, 1, 0 }
   0x8   : > { %p1190_p4 = por %p1182_p1, %p37_p0  ;;  %p1194_p5 = pnand %p881_p2, %p116_p3 }
   0x9   : > { %s128_s21 = sshll.u32 %s1132_s20, 4  ;;  %s1133_s23 = smov [#allocation6]   ;;  %s129_s21 = int_to_ptr.vmem [resolvable:$true] %s128_s21 }
   0xa   : > { %s1390_s18 = scalar_select %p1190_p4, 1, 0 }
   0xb   : > { %s1391_s19 = scalar_select %p1194_p5, 1, 0 }
   0xc   : > { %p949_p6 = pneg %p1194_p5  ;;  %s142_s24 = sshll.u32 %s1133_s23, 4  ;;  %s1206_s24 = int_to_ptr.vmem [resolvable:$true] %s142_s24 }
   0xd   : > { %s1006_s27 = scalar_lea.hbm %s1382_s1, 4096 }
   0xe   : > { %p1202_p7 = pnand %p949_p6, %p1182_p1  ;;  %p1007_p8 = scmp.ne.s32.totalorder %s1382_s1, %s1006_s27 }
   0xf   : > { %p1013_p12 = scmp.lt.u32.totalorder %s1006_s27, %s1382_s1 }
  0x10   : > { %p1008_p9 = pneg %p1202_p7 }
  0x12   : > { %p1009_p10 = pnand %p1008_p9, %p1007_p8 }
  0x14   : > { %p1010_p11 = pneg %p1009_p10 }
  0x16   : > { %p1015_p13 = pnand %p1013_p12, %p1010_p11 }
  0x18   : > { %1018 = shalt.err (!%p1015_p13)
}
  0x19   : > { %s1019_s5 = scalar_lea.vmem %s129_s21, 4096  ;;  %p1027_p6 = scmp.lt.s32.totalorder %s129_s21, %s129_s21 }
  0x1a   : > { %p1020_p0 = scmp.ne.s32.totalorder %s129_s21, %s1019_s5  ;;  %p1028_p1 = scmp.lt.s32.totalorder %s1019_s5, %s1019_s5 }
  0x1c   : > { %p1022_p2 = pnand %p1020_p0, %p1008_p9  ;;  %p1029_p4 = por %p1028_p1, %p1027_p6 }
  0x1e   : > { %p1023_p3 = pneg %p1022_p2 }
  0x20   : > { %p1030_p5 = pnand %p1029_p4, %p1023_p3 }
  0x22   : > { %1033 = shalt.err (!%p1030_p5)
}
  0x23   : > { %s1134_s6 = smov 512   ;;  %s1135_s7 = smov 32  }
  0x24   : > { %952 = dma.hbm_to_vmem [thread:$0]  (!%p1202_p7), %s1382_s1, 4096, %s129_s21, [#allocation5], %s1134_s6, %s1134_s6, %s1135_s7  }
  0x25   : > { %s1034_s12 = scalar_lea.hbm %s1383_s2, 128 }
  0x26   : > { %p1035_p8 = scmp.ne.s32.totalorder %s1383_s2, %s1034_s12  ;;  %p1041_p5 = scmp.lt.u32.totalorder %s1034_s12, %s1383_s2 }
  0x28   : > { %p1037_p1 = pnand %p1035_p8, %p1008_p9 }
  0x2a   : > { %p1038_p4 = pneg %p1037_p1 }
  0x2c   : > { %p1043_p10 = pnand %p1041_p5, %p1038_p4 }
  0x2e   : > { %1046 = shalt.err (!%p1043_p10)
}
  0x2f   : > { %s1047_s21 = scalar_lea.vmem %s1206_s24, 128  ;;  %p1055_p0 = scmp.lt.s32.totalorder %s1206_s24, %s1206_s24 }
  0x30   : > { %p1048_p11 = scmp.ne.s32.totalorder %s1206_s24, %s1047_s21  ;;  %p1056_p2 = scmp.lt.s32.totalorder %s1047_s21, %s1047_s21 }
  0x32   : > { %p1050_p12 = pnand %p1048_p11, %p1008_p9  ;;  %p1057_p3 = por %p1056_p2, %p1055_p0 }
  0x34   : > { %p1051_p13 = pneg %p1050_p12 }
  0x36   : > { %p1058_p6 = pnand %p1057_p3, %p1051_p13 }
  0x38   : > { %1061 = shalt.err (!%p1058_p6)
}
  0x39   : > { %955 = dma.hbm_to_vmem [thread:$0]  (!%p1202_p7), %s1383_s2, 128, %s1206_s24, [#allocation5]  }
  0x3a   : > { %s1256_s29 = sadd.s32 1, %s1130_s15   ;;  %s24_s30 = sadd.s32 1, %s1126_s14 }
  0x3b   : > { %s21_s22 = ssub.s32 %s1130_s15, %s1256_s29  ;;  %p31_p9 = scmp.ne.s32.totalorder %s1126_s14, %s1122_s13 }
  0x3c   : > { %p22_p8 = scmp.eq.s32.totalorder %s21_s22, 0  ;;  %p32_p1 = scmp.eq.s32.totalorder %s1130_s15, 0 }
  0x3d   : > { %p962_p4 = scmp.lt.s32.totalorder %s1130_s15, 2  ;;  %s153_s4 = sand.u32 1, %s1126_s14  }
  0x3e   : > { %s1267_s5 = scalar_select %p22_p8, %s1126_s14, %s24_s30  }
  0x3f   : > { %p33_p5 = por %p32_p1, %p31_p9  ;;  %s885_s6 = sshll.u32 %s153_s4, 4 }
  0x40   : > { %s938_s7 = sshll.u32 %s1130_s15, 8  ;;  %s157_s24 = scalar_lea.vmem [#allocation2], %s885_s6 }
  0x41   : > { %s1273_s10 = scalar_lea.hbm %s1381_s0, %s938_s7  ;;  %s164_s11 = sshll.u32 %s157_s24, 4  ;;  %s1279_s11 = int_to_ptr.vmem [resolvable:$true] %s164_s11 }
  0x42   : > { %p1275_p7 = pnand %p962_p4, %p33_p5  ;;  %s1281_s20 = scalar_lea.sflag [#allocation3], %s153_s4 }
  0x43   : > { %s1062_s23 = scalar_lea.hbm %s1273_s10, 256  ;;  %s1067_s21 = scalar_lea.hbm %s1381_s0, 512 }
  0x44   : > { %p1063_p10 = scmp.ne.s32.totalorder %s1273_s10, %s1062_s23  ;;  %p1064_p11 = pneg %p1275_p7 }
  0x45   : > { %p1068_p0 = scmp.lt.u32.totalorder %s1273_s10, %s1381_s0  ;;  %p1069_p2 = scmp.lt.u32.totalorder %s1067_s21, %s1062_s23 }
  0x46   : > { %p1065_p12 = pnand %p1064_p11, %p1063_p10  ;;  %p1071_p6 = scmp.lt.u32.totalorder %s1062_s23, %s1273_s10 }
  0x47   : > { %p1070_p3 = por %p1069_p2, %p1068_p0 }
  0x48   : > { %p1066_p13 = pneg %p1065_p12 }
  0x49   : > { %p1072_p9 = por %p1071_p6, %p1070_p3 }
  0x4b   : > { %p1073_p8 = pnand %p1072_p9, %p1066_p13 }
  0x4d   : > { %1076 = shalt.err (!%p1073_p8)
}
  0x4e   : > { %s1077_s30 = scalar_lea.vmem %s1279_s11, 256  ;;  %s1136_s22 = smov [#allocation2]  }
  0x4f   : > { %p1078_p1 = scmp.ne.s32.totalorder %s1279_s11, %s1077_s30  ;;  %s1082_s4 = sshll.u32 %s1136_s22, 4  ;;  %s1083_s4 = int_to_ptr.vmem [resolvable:$false] %s1082_s4 }
  0x50   : > { %s1084_s6 = scalar_lea.vmem %s1083_s4, 512  ;;  %p1085_p10 = scmp.lt.s32.totalorder %s1279_s11, %s1083_s4 }
  0x51   : > { %p1080_p4 = pnand %p1078_p1, %p1064_p11  ;;  %p1086_p12 = scmp.lt.s32.totalorder %s1084_s6, %s1077_s30 }
  0x53   : > { %p1081_p5 = pneg %p1080_p4  ;;  %p1087_p0 = por %p1086_p12, %p1085_p10 }
  0x55   : > { %p1088_p2 = pnand %p1087_p0, %p1081_p5 }
  0x57   : > { %1091 = shalt.err (!%p1088_p2)
}
  0x58   : > { %s1137_s7 = smov 64   ;;  %s1138_s8 = smov 4  }
  0x59   : > { %959 = dma.hbm_to_vmem [thread:$0]  (!%p1275_p7), %s1273_s10, 256, %s1279_s11, %s1281_s20, %s1137_s7, %s1137_s7, %s1138_s8  }
  0x5a   : > { %p1394_p11 = scmp.ne.s32.totalorder %s1391_s19, 0 }
  0x5b   : > { %s178_s9 = sand.u32 (!%p1394_p11), 1, %s1122_s13   ;;  %p1395_p13 = scmp.ne.s32.totalorder (!%p1394_p11), %s1390_s18, 0 }
  0x5c   : > { %176 = sbr.rel (%p1394_p11) target bundleno = 518 (0x206), region = 32  ;;  %s1312_s24 = sshll.u32 (!%p1394_p11), %s178_s9, 4 }
  0x5d   : > { %s179_s23 = scalar_lea.sflag (!%p1394_p11), [#allocation3], %s178_s9  ;;  %s182_s25 = scalar_lea.vmem (!%p1394_p11), [#allocation2], %s1312_s24 }
  0x63   : > { %1109 = dma.done.wait (%p1395_p13), %s179_s23, 256  }
  0x64   : > { %1111 = vsyncadd (%p1395_p13), %s179_s23, 4294967040  ;;  %p1396_p3 = scmp.ne.s32.totalorder %s1389_s17, 0 }
  0x66   : > { %1113 = dma.done.wait (%p1396_p3), [#allocation5], 4224  }
  0x67   : > { %1115 = vsyncadd (%p1396_p3), [#allocation5], 4294963072  ;;  %v1139_v0 = vmov 0   ;;  %v225_v1 = vld [vmem:[#allocation4] sm:$0xff]  ;;  %v226_v3 = vld [vmem:[#allocation4 + $0x8] sm:$0xff]  ;;  %vm427_vm0 = vcmask 523264  }
  0x68   : > { %466 = vmatprep.mubr.bf16.mxu0 %v1139_v0  ;;  %519 = vmatprep.mubr.bf16.mxu1 %v1139_v0  ;;  %v229_v2 = vld [vmem:[#allocation4 + $0x20] sm:$0xff]  ;;  %v230_v6 = vld [vmem:[#allocation4 + $0x28] sm:$0xff]  ;;  %v227_v31 = vld [vmem:[#allocation4 + $0x10] sm:$0xff]  ;;  %s892_s17 = sshll.u32 %s879_s16, 2  ;;  %vm788_vm1 = vcmask 7168  }
  0x69   : > { %v897_v4 = vcombine.high %v225_v1, %v229_v2  ;;  %v896_v5 = vcombine.low %v225_v1, %v229_v2  ;;  %v233_v7 = vld [vmem:[#allocation4 + $0x40] sm:$0xff]  ;;  %v899_v9 = vcombine.high %v226_v3, %v230_v6  ;;  %v898_v10 = vcombine.low %v226_v3, %v230_v6  ;;  %v234_v12 = vld [vmem:[#allocation4 + $0x48] sm:$0xff]  ;;  %v231_v32 = vld [vmem:[#allocation4 + $0x30] sm:$0xff]  ;;  %p215_p7 = scmp.lt.s32.totalorder %s892_s17, 7 }
  0x6a   : > { %v237_v8 = vld [vmem:[#allocation4 + $0x60] sm:$0xff]  ;;  %v238_v13 = vld [vmem:[#allocation4 + $0x68] sm:$0xff]  ;;  %v228_v33 = vld [vmem:[#allocation4 + $0x18] sm:$0xff]  ;;  %v901_v37 = vcombine.high %v227_v31, %v231_v32  ;;  %v900_v44 = vcombine.low %v227_v31, %v231_v32 }
  0x6b   : > { %v905_v11 = vcombine.high %v233_v7, %v237_v8  ;;  %v241_v14 = vld [vmem:[#allocation4 + $0x80] sm:$0xff]  ;;  %434 = vmatprep.subr.bf16.mxu0 %v897_v4  ;;  %v907_v15 = vcombine.high %v234_v12, %v238_v13  ;;  %v242_v17 = vld [vmem:[#allocation4 + $0x88] sm:$0xff]  ;;  %487 = vmatprep.subr.bf16.mxu1 %v899_v9  ;;  %v904_v19 = vcombine.low %v233_v7, %v237_v8  ;;  %v232_v34 = vld [vmem:[#allocation4 + $0x38] sm:$0xff]  ;;  %v680_v4 = vlaneseq  ;;  %s1402_s17 = smov (!%p215_p7, %s892_s17), 7 }
  0x6c   : > { %v245_v16 = vld [vmem:[#allocation4 + $0xa0] sm:$0xff]  ;;  %v246_v18 = vld [vmem:[#allocation4 + $0xa8] sm:$0xff]  ;;  %435 = vmatpush1.bf16.msra.mxu0 %v896_v5  ;;  %488 = vmatpush1.bf16.msra.mxu1 %v898_v10  ;;  %v906_v20 = vcombine.low %v234_v12, %v238_v13  ;;  %v903_v38 = vcombine.high %v228_v33, %v232_v34  ;;  %v235_v39 = vld [vmem:[#allocation4 + $0x50] sm:$0xff]  ;;  %v902_v45 = vcombine.low %v228_v33, %v232_v34  ;;  %s893_s18 = sshll.u32 %s1402_s17, 3 }
  0x6d   : > { %436 = vmatprep.subr.bf16.mxu0 %v905_v11  ;;  %v913_v21 = vcombine.high %v241_v14, %v245_v16  ;;  %489 = vmatprep.subr.bf16.mxu1 %v907_v15  ;;  %v915_v22 = vcombine.high %v242_v17, %v246_v18  ;;  %v249_v23 = vld [vmem:[#allocation4 + $0xc0] sm:$0xff]  ;;  %v250_v25 = vld [vmem:[#allocation4 + $0xc8] sm:$0xff]  ;;  %v912_v27 = vcombine.low %v241_v14, %v245_v16  ;;  %v239_v40 = vld [vmem:[#allocation4 + $0x70] sm:$0xff]  ;;  %v1343_v5 = vshrl.u32 %v680_v4, 7  ;;  %s218_s11 = scalar_lea.vmem %s1384_s3, %s893_s18 }
  0x6e   : > { %v253_v24 = vld [vmem:[#allocation4 + $0xe0] sm:$0xff]  ;;  %v254_v26 = vld [vmem:[#allocation4 + $0xe8] sm:$0xff]  ;;  %v914_v28 = vcombine.low %v242_v17, %v246_v18  ;;  %v236_v42 = vld [vmem:[#allocation4 + $0x58] sm:$0xff]  ;;  %v909_v46 = vcombine.high %v235_v39, %v239_v40  ;;  %v908_v52 = vcombine.low %v235_v39, %v239_v40 }
  0x6f   : > { %v921_v29 = vcombine.high %v249_v23, %v253_v24  ;;  %v923_v30 = vcombine.high %v250_v25, %v254_v26  ;;  %v920_v35 = vcombine.low %v249_v23, %v253_v24  ;;  %v922_v36 = vcombine.low %v250_v25, %v254_v26  ;;  %v1004_v41 = vld [vmem:[%s182_s25] sm:$0xff]   ;;  %v240_v43 = vld [vmem:[#allocation4 + $0x78] sm:$0xff] }
  0x70   : > { %437 = vmatpush1.bf16.msra.mxu0 %v904_v19  ;;  %490 = vmatpush1.bf16.msra.mxu1 %v906_v20  ;;  %v911_v47 = vcombine.high %v236_v42, %v240_v43  ;;  %v243_v48 = vld [vmem:[#allocation4 + $0x90] sm:$0xff]  ;;  %v244_v50 = vld [vmem:[#allocation4 + $0x98] sm:$0xff]  ;;  %v910_v53 = vcombine.low %v236_v42, %v240_v43  ;;  %v682_v6 = vsub.s32 0, %v1343_v5  ;;  %v1346_v7 = vld [vmem:[#allocation6] sm:$0xff]  ;;  %v686_v8 = vsub.s32 1, %v1343_v5 }
  0x71   : > { %438 = vmatprep.subr.bf16.mxu0 %v913_v21  ;;  %491 = vmatprep.subr.bf16.mxu1 %v915_v22  ;;  %v247_v49 = vld [vmem:[#allocation4 + $0xb0] sm:$0xff]  ;;  %v248_v51 = vld [vmem:[#allocation4 + $0xb8] sm:$0xff]  ;;  %v690_v9 = vsub.s32 2, %v1343_v5  ;;  %v694_v10 = vsub.s32 3, %v1343_v5 }
  0x72   : > { %v917_v54 = vcombine.high %v243_v48, %v247_v49  ;;  %v919_v55 = vcombine.high %v244_v50, %v248_v51  ;;  %v251_v56 = vld [vmem:[#allocation4 + $0xd0] sm:$0xff]  ;;  %v1005_v58 = vld [vmem:[%s182_s25 + $0x8] sm:$0xff]   ;;  %v916_v61 = vcombine.low %v243_v48, %v247_v49  ;;  %v918_v62 = vcombine.low %v244_v50, %v248_v51 }
  0x73   : > { %v255_v57 = vld [vmem:[#allocation4 + $0xf0] sm:$0xff]  ;;  %v252_v59 = vld [vmem:[#allocation4 + $0xd8] sm:$0xff]  ;;  %v683_v11 = vrot.slane %v1346_v7, %v682_v6  ;;  %v687_v12 = vrot.slane %v1346_v7, %v686_v8  ;;  %v691_v13 = vrot.slane %v1346_v7, %v690_v9  ;;  %v695_v21 = vrot.slane %v1346_v7, %v694_v10 }
  0x74   : > { %439 = vmatpush1.bf16.msra.mxu0 %v912_v27  ;;  %492 = vmatpush1.bf16.msra.mxu1 %v914_v28  ;;  %v256_v60 = vld [vmem:[#allocation4 + $0xf8] sm:$0xff]  ;;  %v925_v63 = vcombine.high %v251_v56, %v255_v57  ;;  %v924_v2 = vcombine.low %v251_v56, %v255_v57  ;;  %v702_v57 = vsub.s32 5, %v1343_v5 }
  0x75   : > { %440 = vmatprep.subr.bf16.mxu0 %v921_v29  ;;  %493 = vmatprep.subr.bf16.mxu1 %v923_v30  ;;  %v927_v1 = vcombine.high %v252_v59, %v256_v60  ;;  %v926_v3 = vcombine.low %v252_v59, %v256_v60 }
  0x78   : > { %441 = vmatpush1.bf16.msra.mxu0 %v920_v35  ;;  %494 = vmatpush1.bf16.msra.mxu1 %v922_v36 }
  0x79   : > { %540 = vmatprep.subr.bf16.mxu0 %v901_v37  ;;  %593 = vmatprep.subr.bf16.mxu1 %v903_v38 }
  0x7b   : > { %928 = vmatmul.mubr.msk.bf16.vlgmr.msra.gmra.mrb[0].mxu0 %vm427_vm0, %v1004_v41  ;;  %930 = vmatmul.mubr.msk.bf16.vlgmr.msra.gmra.mrb[0].mxu1 %vm427_vm0, %v1004_v41 }
  0x7c   : > { %541 = vmatpush1.bf16.msra.mxu0 %v900_v44  ;;  %594 = vmatpush1.bf16.msra.mxu1 %v902_v45  ;;  %v698_v45 = vsub.s32 4, %v1343_v5 }
  0x7d   : > { %542 = vmatprep.subr.bf16.mxu0 %v909_v46  ;;  %595 = vmatprep.subr.bf16.mxu1 %v911_v47 }
  0x7e   : > { %476 = vmatprep.mubr.bf16.mxu0 %v1139_v0  ;;  %529 = vmatprep.mubr.bf16.mxu1 %v1139_v0  ;;  %v699_v10 = vrot.slane %v1346_v7, %v698_v45 }
  0x80   : > { %543 = vmatpush1.bf16.msra.mxu0 %v908_v52  ;;  %596 = vmatpush1.bf16.msra.mxu1 %v910_v53 }
  0x81   : > { %544 = vmatprep.subr.bf16.mxu0 %v917_v54  ;;  %597 = vmatprep.subr.bf16.mxu1 %v919_v55 }
  0x83   : > { %929 = vmatmul.mubr.msk.bf16.gmra.mrb[4].mxu0 %vm427_vm0, %v1005_v58  ;;  %931 = vmatmul.mubr.msk.bf16.gmra.mrb[4].mxu1 %vm427_vm0, %v1005_v58 }
  0x84   : > { %545 = vmatpush1.bf16.msra.mxu0 %v916_v61  ;;  %598 = vmatpush1.bf16.msra.mxu1 %v918_v62 }
  0x85   : > { %546 = vmatprep.subr.bf16.mxu0 %v925_v63  ;;  %599 = vmatprep.subr.bf16.mxu1 %v927_v1 }
  0x86   : > { %572 = vmatprep.mubr.bf16.mxu0 %v1139_v0  ;;  %625 = vmatprep.mubr.bf16.mxu1 %v1139_v0 }
  0x88   : > { %547 = vmatpush1.bf16.msra.mxu0 %v924_v2  ;;  %600 = vmatpush1.bf16.msra.mxu1 %v926_v3  ;;  %v706_v3 = vsub.s32 6, %v1343_v5 }
  0x8b   : > { %932 = vmatmul.mubr.msk.bf16.vlgmr.msra.gmra.mrb[8].mxu0 %vm427_vm0, %v1004_v41  ;;  %934 = vmatmul.mubr.msk.bf16.vlgmr.msra.gmra.mrb[8].mxu1 %vm427_vm0, %v1004_v41 }
  0x8c   : > { %582 = vmatprep.mubr.bf16.mxu0 %v1139_v0  ;;  %635 = vmatprep.mubr.bf16.mxu1 %v1139_v0 }
  0x93   : > { %933 = vmatmul.mubr.msk.bf16.gmra.mrb[12].mxu0 %vm427_vm0, %v1005_v58  ;;  %935 = vmatmul.mubr.msk.bf16.gmra.mrb[12].mxu1 %vm427_vm0, %v1005_v58 }
 0x14e   : > { %v468_v0 = vpop.f32.mrb[0].mxu0  ;;  %v521_v16 = vpop.f32.mrb[0].mxu1 }
 0x14f   : > { %v646_v14 = vmax.f32 %v468_v0, 0.0  ;;  %v470_v15 = vpop.f32.mrb[1].mxu0  ;;  %v648_v19 = vmax.f32 %v521_v16, 0.0  ;;  %v523_v20 = vpop.f32.mrb[1].mxu1  ;;  %v703_v16 = vrot.slane %v1346_v7, %v702_v57 }
 0x150   : > { %v647_v17 = vmax.f32 %v470_v15, 0.0  ;;  %v472_v18 = vpop.f32.mrb[2].mxu0  ;;  %v649_v25 = vmax.f32 %v523_v20, 0.0  ;;  %v525_v26 = vpop.f32.mrb[2].mxu1 }
 0x151   : > { %v720_v22 = vmul.f32 %v683_v11, %v646_v14  ;;  %v654_v23 = vmax.f32 %v472_v18, 0.0  ;;  %v474_v24 = vpop.f32.mrb[3].mxu0  ;;  %v722_v28 = vmul.f32 %v691_v13, %v648_v19  ;;  %v656_v30 = vmax.f32 %v525_v26, 0.0  ;;  %v527_v31 = vpop.f32.mrb[3].mxu1 }
 0x152   : > { %v721_v27 = vmul.f32 %v687_v12, %v647_v17  ;;  %v655_v29 = vmax.f32 %v474_v24, 0.0  ;;  %v657_v33 = vmax.f32 %v527_v31, 0.0  ;;  %v723_v36 = vmul.f32 %v695_v21, %v649_v25 }
 0x153   : > { %v728_v32 = vmul.f32 %v683_v11, %v654_v23  ;;  %v730_v37 = vmul.f32 %v691_v13, %v656_v30  ;;  %v710_v17 = vsub.s32 7, %v1343_v5 }
 0x154   : > { %v752_v34 = vadd.f32 %v721_v27, %v720_v22  ;;  %v729_v35 = vmul.f32 %v687_v12, %v655_v29  ;;  %v731_v41 = vmul.f32 %v695_v21, %v657_v33  ;;  %v707_v22 = vrot.slane %v1346_v7, %v706_v3 }
 0x156   : > { %v753_v38 = vadd.f32 %v752_v34, %v722_v28  ;;  %v761_v39 = vadd.f32 %v729_v35, %v728_v32  ;;  %v478_v40 = vpop.f32.mrb[4].mxu0  ;;  %v531_v44 = vpop.f32.mrb[4].mxu1 }
 0x157   : > { %v662_v42 = vmax.f32 %v478_v40, 0.0  ;;  %v480_v43 = vpop.f32.mrb[5].mxu0  ;;  %v664_v50 = vmax.f32 %v531_v44, 0.0  ;;  %v533_v51 = vpop.f32.mrb[5].mxu1 }
 0x158   : > { %v754_v46 = vadd.f32 %v753_v38, %v723_v36  ;;  %v762_v47 = vadd.f32 %v761_v39, %v730_v37  ;;  %v663_v48 = vmax.f32 %v480_v43, 0.0  ;;  %v482_v49 = vpop.f32.mrb[6].mxu0  ;;  %v665_v55 = vmax.f32 %v533_v51, 0.0  ;;  %v535_v56 = vpop.f32.mrb[6].mxu1 }
 0x159   : > { %v736_v52 = vmul.f32 %v683_v11, %v662_v42  ;;  %v670_v53 = vmax.f32 %v482_v49, 0.0  ;;  %v484_v54 = vpop.f32.mrb[7].mxu0  ;;  %v738_v60 = vmul.f32 %v691_v13, %v664_v50  ;;  %v537_v62 = vpop.f32.mrb[7].mxu1  ;;  %v672_v1 = vmax.f32 %v535_v56, 0.0 }
 0x15a   : > { %v763_v58 = vadd.f32 %v762_v47, %v731_v41  ;;  %v737_v59 = vmul.f32 %v687_v12, %v663_v48  ;;  %v671_v61 = vmax.f32 %v484_v54, 0.0  ;;  %v673_v2 = vmax.f32 %v537_v62, 0.0 }
 0x15b   : > { %v744_v63 = vmul.f32 %v683_v11, %v670_v53  ;;  %v739_v8 = vmul.f32 %v695_v21, %v665_v55  ;;  %v746_v9 = vmul.f32 %v691_v13, %v672_v1 }
 0x15c   : > { %v770_v4 = vadd.f32 %v737_v59, %v736_v52  ;;  %v745_v6 = vmul.f32 %v687_v12, %v671_v61  ;;  %v747_v18 = vmul.f32 %v695_v21, %v673_v2  ;;  %v711_v21 = vrot.slane %v1346_v7, %v710_v17 }
 0x15e   : > { %v771_v0 = vadd.f32 %v770_v4, %v738_v60  ;;  %v779_v14 = vadd.f32 %v745_v6, %v744_v63  ;;  %v574_v15 = vpop.f32.mrb[8].mxu0  ;;  %v627_v20 = vpop.f32.mrb[8].mxu1 }
 0x15f   : > { %v650_v19 = vmax.f32 %v574_v15, 0.0  ;;  %v576_v11 = vpop.f32.mrb[9].mxu0  ;;  %v652_v13 = vmax.f32 %v627_v20, 0.0  ;;  %v629_v26 = vpop.f32.mrb[9].mxu1 }
 0x160   : > { %v772_v23 = vadd.f32 %v771_v0, %v739_v8  ;;  %v780_v24 = vadd.f32 %v779_v14, %v746_v9  ;;  %v651_v12 = vmax.f32 %v576_v11, 0.0  ;;  %v578_v25 = vpop.f32.mrb[10].mxu0  ;;  %v631_v30 = vpop.f32.mrb[10].mxu1  ;;  %v653_v37 = vmax.f32 %v629_v26, 0.0 }
 0x161   : > { %v724_v27 = vmul.f32 %v699_v10, %v650_v19  ;;  %v658_v28 = vmax.f32 %v578_v25, 0.0  ;;  %v580_v29 = vpop.f32.mrb[11].mxu0  ;;  %v633_v5 = vpop.f32.mrb[11].mxu1  ;;  %v726_v36 = vmul.f32 %v707_v22, %v652_v13  ;;  %v660_v39 = vmax.f32 %v631_v30, 0.0 }
 0x162   : > { %v781_v31 = vadd.f32 %v780_v24, %v747_v18  ;;  %v725_v32 = vmul.f32 %v703_v16, %v651_v12  ;;  %v659_v33 = vmax.f32 %v580_v29, 0.0  ;;  %v661_v41 = vmax.f32 %v633_v5, 0.0 }
 0x163   : > { %v755_v34 = vadd.f32 %v754_v46, %v724_v27  ;;  %v732_v35 = vmul.f32 %v699_v10, %v658_v28  ;;  %v727_v49 = vmul.f32 %v711_v21, %v653_v37  ;;  %v734_v51 = vmul.f32 %v707_v22, %v660_v39 }
 0x164   : > { %v733_v38 = vmul.f32 %v703_v16, %v659_v33  ;;  %v735_v54 = vmul.f32 %v711_v21, %v661_v41 }
 0x165   : > { %v764_v40 = vadd.f32 %v763_v58, %v732_v35  ;;  %v756_v42 = vadd.f32 %v755_v34, %v725_v32 }
 0x166   : > { %v584_v43 = vpop.f32.mrb[12].mxu0  ;;  %v637_v48 = vpop.f32.mrb[12].mxu1 }
 0x167   : > { %v765_v44 = vadd.f32 %v764_v40, %v733_v38  ;;  %v666_v45 = vmax.f32 %v584_v43, 0.0  ;;  %v586_v47 = vpop.f32.mrb[13].mxu0  ;;  %v757_v50 = vadd.f32 %v756_v42, %v726_v36  ;;  %v668_v7 = vmax.f32 %v637_v48, 0.0  ;;  %v639_v46 = vpop.f32.mrb[13].mxu1 }
 0x168   : > { %v667_v52 = vmax.f32 %v586_v47, 0.0  ;;  %v588_v53 = vpop.f32.mrb[14].mxu0  ;;  %v641_v59 = vpop.f32.mrb[14].mxu1  ;;  %v669_v63 = vmax.f32 %v639_v46, 0.0 }
 0x169   : > { %v740_v55 = vmul.f32 %v699_v10, %v666_v45  ;;  %v674_v56 = vmax.f32 %v588_v53, 0.0  ;;  %v590_v57 = vpop.f32.mrb[15].mxu0  ;;  %v758_v58 = vadd.f32 %v757_v50, %v727_v49  ;;  %v742_v61 = vmul.f32 %v707_v22, %v668_v7  ;;  %v643_v1 = vpop.f32.mrb[15].mxu1 }
 0x16a   : > { %v741_v60 = vmul.f32 %v703_v16, %v667_v52  ;;  %v675_v62 = vmax.f32 %v590_v57, 0.0  ;;  %v676_v4 = vmax.f32 %v641_v59, 0.0  ;;  %v766_v6 = vadd.f32 %v765_v44, %v734_v51 }
 0x16b   : > { %v773_v2 = vadd.f32 %v772_v23, %v740_v55  ;;  %v748_v3 = vmul.f32 %v699_v10, %v674_v56  ;;  %759 = vadd.xlane.f32.xlu0 %v758_v58  ;;  %v677_v0 = vmax.f32 %v643_v1, 0.0  ;;  %v743_v19 = vmul.f32 %v711_v21, %v669_v63 }
 0x16c   : > { %v749_v8 = vmul.f32 %v703_v16, %v675_v62  ;;  %v767_v14 = vadd.f32 %v766_v6, %v735_v54  ;;  %v750_v18 = vmul.f32 %v707_v22, %v676_v4 }
 0x16d   : > { %v782_v9 = vadd.f32 %v781_v31, %v748_v3  ;;  %v774_v15 = vadd.f32 %v773_v2, %v741_v60  ;;  %v751_v20 = vmul.f32 %v711_v21, %v677_v0 }
 0x16f   : > { %v783_v17 = vadd.f32 %v782_v9, %v749_v8  ;;  %768 = vadd.xlane.f32.xlu0 %v767_v14  ;;  %v775_v11 = vadd.f32 %v774_v15, %v742_v61 }
 0x171   : > { %v776_v24 = vadd.f32 %v775_v11, %v743_v19  ;;  %v784_v12 = vadd.f32 %v783_v17, %v750_v18 }
 0x173   : > { %777 = vadd.xlane.f32.xlu1 %v776_v24  ;;  %v785_v23 = vadd.f32 %v784_v12, %v751_v20 }
 0x177   : > { %786 = vadd.xlane.f32.xlu1 %v785_v23 }
 0x1f8   : > { %v760_v10 = vpop.xlane.xlu0 %759 }
 0x1f9   : > { %789 = vst.msk [vmem:[%s218_s11] sm:$0xff] %vm788_vm1, %v760_v10 }
 0x1fc   : > { %v769_v16 = vpop.xlane.xlu0 %768 }
 0x1fd   : > { %790 = vst.msk [vmem:[%s218_s11 + $0x8] sm:$0xff] %vm788_vm1, %v769_v16 }
 0x200   : > { %v778_v22 = vpop.xlane.xlu1 %777 }
 0x201   : > { %791 = vst.msk [vmem:[%s218_s11 + $0x10] sm:$0xff] %vm788_vm1, %v778_v22 }
 0x204   : > { %v787_v25 = vpop.xlane.xlu1 %786 }
 0x205   : > { %792 = vst.msk [vmem:[%s218_s11 + $0x18] sm:$0xff] %vm788_vm1, %v787_v25 }
 0x206 PF: > { %p14_p6 = scmp.ge.s32.totalorder %s1256_s29, 4   ;;  %s1397_s12 = smov %s1122_s13 }
 0x207   : > { %s1398_s13 = smov %s1126_s14  ;;  %s1399_s14 = smov %s1267_s5 }
 0x208   : > { %s1400_s15 = smov %s1256_s29  ;;  %16 = sbr.rel (!%p14_p6) target bundleno = 4 (0x4), region = 80 }
 0x20f   :  { %815 = vsyncpa [#allocation3], 1 }
 0x210   :  { %817 = vsyncpa [#allocation3 + $0x1], 1 }
 0x211   :  { %818 = vsyncpa [#allocation5], 1 }

</bundles_post_ra>
